<compile_context>
chip_gen: v7x
topology: tpu7x:2x2x1
jax: 0.10.0
libtpu: 0.0.40
codegen_flags: <defaults>
</compile_context>

<pallas_src>
import jax
import jax.numpy as jnp
from jax import lax
from jax.experimental import pallas as pl
from jax.experimental.pallas import tpu as pltpu

_T = 0.5          # temperature from the module
_EPS = 1e-12      # F.normalize eps default
_DEFAULT_TILE_B = 512


def _round_up(x, m):
    return ((x + m - 1) // m) * m


def _gnet_binary_kernel(x_ref, pn_ref, out_ref):
    # x_ref:   [TILE_B, dim]   per-step tile of the batch (streamed from HBM)
    # pn_ref:  [N, dim]        already L2-normalized, resident across steps
    # out_ref: [1, 1, TILE_B]  lane-dense class-0 probabilities for this tile
    x = x_ref[...].astype(jnp.float32)
    pn = pn_ref[...].astype(jnp.float32)

    # Row-wise L2 normalize via rsqrt-multiply:
    # rsqrt(max(sumsq, eps^2)) == 1 / max(||x||, eps)  (matches F.normalize).
    inv = lax.rsqrt(jnp.maximum(jnp.sum(x * x, axis=1, keepdims=True),
                                _EPS * _EPS))
    xn = x * inv

    # Transposed logits [N, TILE_B]; contracting dims (1, 1) lets the MXU
    # consume both operands without an explicit transpose.
    logits = lax.dot_general(
        pn, xn,
        dimension_numbers=(((1,), (1,)), ((), ())),
        preferred_element_type=jnp.float32,
    ) * (1.0 / _T)

    # Softmax over the class axis (axis 0).  |logits| <= 1/T = 2, so exp
    # cannot overflow and the usual max-subtraction is skipped.
    e = jnp.exp(logits)                                    # [N, TILE_B]
    denom = jnp.sum(e, axis=0, keepdims=True)              # [1, TILE_B]
    out_ref[0] = e[0:1, :] * pl.reciprocal(denom, approx=True)


def gnet_binary_forward(x, prototype, *, tile_b=_DEFAULT_TILE_B):
    """x: [B, dim] (f32 or bf16), prototype: [N, dim] -> [B] f32 class-0 probs."""
    B, dim = x.shape
    N, dim2 = prototype.shape
    assert dim == dim2

    # Hoist the prototype normalization out of the per-step body: it is a
    # parameter and its normalized value is a resident block for all steps.
    p = prototype.astype(jnp.float32)
    pn = p * lax.rsqrt(jnp.maximum(jnp.sum(p * p, axis=1, keepdims=True),
                                   _EPS * _EPS))

    # Batch tiling: large tiles (default 512 rows) for HBM-roofline DMA.
    # The last (ragged) tile is handled by zero-padding B.
    tile_b = min(tile_b, _round_up(B, 8))
    b_pad = _round_up(B, tile_b)
    if b_pad != B:
        x = jnp.pad(x, ((0, b_pad - B), (0, 0)))
    num_tiles = b_pad // tile_b

    # NOTE: x may be supplied as bf16 in HBM to halve bytes read (HBM-bound at
    # large B); the kernel casts to f32 for the math.
    out = pl.pallas_call(
        _gnet_binary_kernel,
        out_shape=jax.ShapeDtypeStruct((num_tiles, 1, tile_b), jnp.float32),
        grid=(num_tiles,),
        in_specs=[
            pl.BlockSpec((tile_b, dim), lambda i: (i, 0)),   # x: streamed tiles
            pl.BlockSpec((N, dim), lambda i: (0, 0)),        # pn: resident
        ],
        out_specs=pl.BlockSpec((1, 1, tile_b), lambda i: (i, 0, 0)),
        compiler_params=pltpu.CompilerParams(
            # Independent batch tiles -> megacore sharding on v7x
            # (no effect on v5e / v6e, which have a single TensorCore).
            dimension_semantics=("parallel",),
        ),
    )(x, pn)
    return out.reshape(b_pad)[:B]


def _reference(x, prototype):
    xn = x / jnp.maximum(jnp.linalg.norm(x, axis=1, keepdims=True), _EPS)
    pn = prototype / jnp.maximum(
        jnp.linalg.norm(prototype, axis=1, keepdims=True), _EPS)
    return jax.nn.softmax(xn @ pn.T / _T, axis=1)[:, 0]


if __name__ == "__main__":
    key = jax.random.PRNGKey(0)
    k_x, k_p, k_x2 = jax.random.split(key, 3)

    # Small shapes consistent with the module: batch=8, dim=32, N=4 prototypes.
    B, dim, N = 8, 32, 4
    x = jax.random.normal(k_x, (B, dim), dtype=jnp.float32)
    prototype = jax.random.normal(k_p, (N, dim), dtype=jnp.float32)

    out = gnet_binary_forward(x, prototype)
    jax.block_until_ready(out)
    ref = _reference(x, prototype)
    assert out.shape == (B,)
    assert jnp.allclose(out, ref, atol=2e-3, rtol=2e-3), (out, ref)

    # Second small case exercising the batch grid + ragged last tile:
    # B=20 with 8-row tiles -> 3 grid steps, 4 zero-padded rows sliced off.
    B2 = 20
    x2 = jax.random.normal(k_x2, (B2, dim), dtype=jnp.float32)
    out2 = gnet_binary_forward(x2, prototype, tile_b=8)
    jax.block_until_ready(out2)
    ref2 = _reference(x2, prototype)
    assert out2.shape == (B2,)
    assert jnp.allclose(out2, ref2, atol=2e-3, rtol=2e-3), (out2, ref2)

    print("KERNEL_OK")
</pallas_src>

<mosaic_0001>
module attributes {stable_mosaic.version = 11 : i64} {
  func.func @_gnet_binary_kernel(%arg0: i32, %arg1: memref<8x32xf32, #tpu.memory_space<vmem>>, %arg2: memref<4x32xf32, #tpu.memory_space<vmem>>, %arg3: memref<1x1x8xf32, #tpu.memory_space<vmem>>) attributes {dimension_semantics = [#tpu.dimension_semantics<parallel>], iteration_bounds = array<i64: 1>, scalar_prefetch = 0 : i64, scratch_operands = 0 : i64, tpu.core_type = #tpu.core_type<tc>, window_params = [{transform_indices = @transform_0, window_bounds = array<i64: 8, 32>}, {pipeline_mode = #tpu.pipeline_mode<synchronous>, transform_indices = @transform_1, window_bounds = array<i64: 4, 32>}, {transform_indices = @transform_2, window_bounds = array<i64: 1, 1, 8>}]} {
    %c0 = arith.constant 0 : index
    %c0_0 = arith.constant 0 : index
    %0 = vector.load %arg1[%c0, %c0_0] : memref<8x32xf32, #tpu.memory_space<vmem>>, vector<8x32xf32>
    %c0_1 = arith.constant 0 : index
    %c0_2 = arith.constant 0 : index
    %1 = vector.load %arg2[%c0_1, %c0_2] : memref<4x32xf32, #tpu.memory_space<vmem>>, vector<4x32xf32>
    %2 = arith.mulf %0, %0 : vector<8x32xf32>
    %cst = arith.constant dense<0.000000e+00> : vector<8xf32>
    %3 = vector.multi_reduction <add>, %2, %cst [1] : vector<8x32xf32> to vector<8xf32>
    %4 = vector.shape_cast %3 : vector<8xf32> to vector<8x1xf32>
    %cst_3 = arith.constant 1.000000e-24 : f32
    %5 = vector.broadcast %cst_3 : f32 to vector<8x1xf32>
    %6 = arith.maximumf %4, %5 : vector<8x1xf32>
    %7 = math.rsqrt %6 : vector<8x1xf32>
    %8 = vector.broadcast %7 : vector<8x1xf32> to vector<8x32xf32>
    %9 = arith.mulf %0, %8 : vector<8x32xf32>
    %cst_4 = arith.constant dense<0.000000e+00> : vector<4x8xf32>
    %10 = tpu.matmul %1, %9, %cst_4 {dimension_numbers = #tpu.dot_dimension_numbers<[1], [1], [0], [0], [0, 0, 1, 0], [], []>} : vector<4x32xf32>, vector<8x32xf32>, vector<4x8xf32> -> vector<4x8xf32>
    %cst_5 = arith.constant 2.000000e+00 : f32
    %11 = vector.broadcast %cst_5 : f32 to vector<4x8xf32>
    %12 = arith.mulf %10, %11 : vector<4x8xf32>
    %13 = math.exp %12 : vector<4x8xf32>
    %cst_6 = arith.constant dense<0.000000e+00> : vector<8xf32>
    %14 = vector.multi_reduction <add>, %13, %cst_6 [0] : vector<4x8xf32> to vector<8xf32>
    %15 = vector.shape_cast %14 : vector<8xf32> to vector<1x8xf32>
    %16 = vector.extract_strided_slice %13 {offsets = [0, 0], sizes = [1, 8], strides = [1, 1]} : vector<4x8xf32> to vector<1x8xf32>
    %17 = tpu.reciprocal %15 {approx = true} : vector<1x8xf32> -> vector<1x8xf32>
    %18 = arith.mulf %16, %17 : vector<1x8xf32>
    %c0_7 = arith.constant 0 : index
    %c0_8 = arith.constant 0 : index
    %c0_9 = arith.constant 0 : index
    %19 = vector.load %arg3[%c0_7, %c0_8, %c0_9] : memref<1x1x8xf32, #tpu.memory_space<vmem>>, vector<1x1x8xf32>
    %20 = vector.shape_cast %19 : vector<1x1x8xf32> to vector<1x8xf32>
    %21 = vector.shape_cast %18 : vector<1x8xf32> to vector<1x1x8xf32>
    tpu.vector_store %arg3[%c0_7, %c0_8, %c0_9], %21 {strides = array<i32>} : memref<1x1x8xf32, #tpu.memory_space<vmem>>, vector<1x1x8xf32>,
    return
  }
  func.func @transform_0(%arg0: i32) -> (i32, i32) {
    %c0_i32 = arith.constant 0 : i32
    %c0_i32_0 = arith.constant 0 : i32
    return %arg0, %c0_i32 : i32, i32
  }
  func.func @transform_1(%arg0: i32) -> (i32, i32) {
    %c0_i32 = arith.constant 0 : i32
    %c0_i32_0 = arith.constant 0 : i32
    %c0_i32_1 = arith.constant 0 : i32
    return %c0_i32, %c0_i32_0 : i32, i32
  }
  func.func @transform_2(%arg0: i32) -> (i32, i32, i32) {
    %c0_i32 = arith.constant 0 : i32
    %c0_i32_0 = arith.constant 0 : i32
    %c0_i32_1 = arith.constant 0 : i32
    return %arg0, %c0_i32, %c0_i32_0 : i32, i32, i32
  }
}

</mosaic_0001>

<bundles_post_ra>
// kernel: tpu_custom_call.1
= control target key start
LH: loop header
LB: loop body
LE: loop exit
PB: predicated region body
PF: predicated region fallthrough
CT: control target
= control target key end

     0   :  { %7 = vsyncpa [#allocation3], 0  ;;  %s301_s0 = inlined_call_operand.hbm [shape: f32[8,32], index: 0, kind: input, shape index: {}]   ;;  %s302_s1 = inlined_call_operand.hbm [shape: f32[4,32], index: 1, kind: input, shape index: {}]   ;;  %s303_s2 = inlined_call_operand.hbm [shape: f32[1,1,8], index: 2, kind: output, shape index: {}]  }
   0x1   :  { %8 = vsyncpa [#allocation6], 0 }
   0x2   :  { %9 = vsyncpa [#allocation4], 0  ;;  %s245_s9 = smov [#allocation2]   ;;  %s246_s11 = smov [#allocation5]  }
   0x3   :  { %s16_s10 = sshll.u32 %s245_s9, 4  ;;  %s26_s12 = sshll.u32 %s246_s11, 4  ;;  %s17_s10 = int_to_ptr.vmem [resolvable:$true] %s16_s10  ;;  %s27_s12 = int_to_ptr.vmem [resolvable:$true] %s26_s12 }
   0x4   :  { %s173_s15 = scalar_lea.hbm %s301_s0, 128 }
   0x5   :  { %p174_p0 = scmp.ne.s32.totalorder %s301_s0, %s173_s15  ;;  %p177_p1 = scmp.lt.u32.totalorder %s173_s15, %s301_s0 }
   0x7   :  { %p179_p2 = pnand %p177_p1, %p174_p0 }
   0x9   :  { %182 = shalt.err (!%p179_p2)
}
   0xa   :  { %s183_s20 = scalar_lea.vmem %s17_s10, 128  ;;  %p188_p4 = scmp.lt.s32.totalorder %s17_s10, %s17_s10 }
   0xb   :  { %p184_p3 = scmp.ne.s32.totalorder %s17_s10, %s183_s20  ;;  %p189_p5 = scmp.lt.s32.totalorder %s183_s20, %s183_s20 }
   0xd   :  { %p190_p6 = por %p189_p5, %p188_p4 }
   0xf   :  { %p191_p7 = pnand %p190_p6, %p184_p3 }
  0x11   :  { %194 = shalt.err (!%p191_p7)
}
  0x12   :  { %19 = dma.hbm_to_vmem [thread:$0]  %s301_s0, 128, %s17_s10, [#allocation3]  }
  0x13   :  { %s195_s25 = scalar_lea.hbm %s302_s1, 64 }
  0x14   :  { %p196_p8 = scmp.ne.s32.totalorder %s302_s1, %s195_s25  ;;  %p199_p9 = scmp.lt.u32.totalorder %s195_s25, %s302_s1 }
  0x16   :  { %p201_p10 = pnand %p199_p9, %p196_p8 }
  0x18   :  { %204 = shalt.err (!%p201_p10)
}
  0x19   :  { %s205_s30 = scalar_lea.vmem %s27_s12, 64  ;;  %p210_p12 = scmp.lt.s32.totalorder %s27_s12, %s27_s12 }
  0x1a   :  { %p206_p11 = scmp.ne.s32.totalorder %s27_s12, %s205_s30  ;;  %p211_p13 = scmp.lt.s32.totalorder %s205_s30, %s205_s30 }
  0x1c   :  { %p212_p0 = por %p211_p13, %p210_p12 }
  0x1e   :  { %p213_p1 = pnand %p212_p0, %p206_p11 }
  0x20   :  { %216 = shalt.err (!%p213_p1)
}
  0x21   :  { %29 = dma.hbm_to_vmem [thread:$0]  %s302_s1, 64, %s27_s12, [#allocation6]  }
  0x22   :  { %239 = dma.done.wait [#allocation3], 128  }
  0x23   :  { %240 = vsyncadd [#allocation3], 4294967168 }
  0x24   :  { %241 = dma.done.wait [#allocation6], 64  }
  0x25   :  { %242 = vsyncadd [#allocation6], 4294967232  ;;  %v36_v0 = vld [vmem:[#allocation2] sm:$0xff]  ;;  %vm39_vm0 = vcmask 261120   ;;  %v247_v3 = vmov 0.0   ;;  %vm248_vm1 = vmmov 0  }
  0x26   :  { %v38_v1 = vmul.f32 %v36_v0, %v36_v0  ;;  %157 = vmatprep.subr.mxu0 %v247_v3  ;;  %159 = vmatprep.mubr.msk.f32.mxu0 %vm248_vm1, %v247_v3  ;;  %v37_v8 = vld [vmem:[#allocation5] sm:$0xf]  ;;  %vm125_vm2 = vcmask 60416   ;;  %s249_s1 = smov [#allocation7]   ;;  %vm135_vm3 = vcmask 57344  }
  0x27   :  { %s143_s4 = sshll.u32 %s249_s1, 4  ;;  %s144_s4 = int_to_ptr.vmem [resolvable:$true] %s143_s4 }
  0x28   :  { %v40_v2 = vsel %vm39_vm0, %v38_v1, 0.0  ;;  %s217_s5 = scalar_lea.vmem %s144_s4, 16  ;;  %s221_s6 = scalar_lea.vmem %s144_s4, 32 }
  0x29   :  { %41 = vadd.xlane.f32.xlu0 %v40_v2  ;;  %p218_p2 = scmp.ne.s32.totalorder %s144_s4, %s217_s5  ;;  %p222_p3 = scmp.lt.s32.totalorder %s144_s4, %s144_s4 }
  0x2a   :  { %p223_p4 = scmp.lt.s32.totalorder %s221_s6, %s217_s5 }
  0x2c   :  { %p224_p5 = por %p223_p4, %p222_p3 }
  0x2e   :  { %p225_p6 = pnand %p224_p5, %p218_p2 }
  0xb6   :  { %v42_v4 = vpop.xlane.xlu0 %41 }
  0xb7   :  { %v43_v5 = vmax.f32 %v42_v4, 1e-24 }
  0xb9   :  { %167 = vrsqrt.f32 %v43_v5 }
  0xc3   :  { %v168_v6 = vpop.eup %167 }
  0xc4   :  { %v45_v7 = vmul.f32 %v168_v6, %v36_v0 }
  0xc6   :  { %158 = vmatpush3.xpose.msk.msra.mxu0 %vm39_vm0, %v45_v7 }
  0xc9   :  { %160 = vmatmul.mubr.msk.f32.vlgmr.msra.gmra.mrb[0].mxu0 %vm39_vm0, %v37_v8 }
 0x19c   :  { %v118_v9 = vpop.f32.mrb[0].mxu0 }
 0x19d   :  { %v122_v10 = vmul.f32 2.0, %v118_v9  ;;  %v161_v11 = vpop.f32.mrb[1].mxu0 }
 0x19f   :  { %v123_v12 = vmul.f32 1.442695, %v122_v10 }
 0x1a1   :  { %169 = vpow2.f32 %v123_v12 }
 0x1ab   :  { %v170_v13 = vpop.eup %169 }
 0x1ac   :  { %v126_v14 = vsel %vm125_vm2, %v170_v13, 0.0 }
 0x1ad   :  { %v127_v15 = vrot.slane %v126_v14, 4 }
 0x1af   :  { %v128_v16 = vadd.f32 %v127_v15, %v126_v14 }
 0x1b1   :  { %v129_v17 = vrot.slane %v128_v16, 2 }
 0x1b3   :  { %v130_v18 = vadd.f32 %v129_v17, %v128_v16 }
 0x1b5   :  { %v131_v19 = vrot.slane %v130_v18, 1 }
 0x1b7   :  { %v132_v20 = vadd.f32 %v131_v19, %v130_v18 }
 0x1b9   :  { %171 = vrcp.f32 %v132_v20 }
 0x1c3   :  { %v172_v21 = vpop.eup %171 }
 0x1c4   :  { %v134_v22 = vmul.f32 %v172_v21, %v170_v13 }
 0x1c6   :  { %136 = vst.msk [vmem:[#allocation7] sm:$0x1] %vm135_vm3, %v134_v22 }
 0x1c7   :  { %228 = shalt.err (!%p225_p6)
}
 0x1c8   :  { %s229_s9 = scalar_lea.hbm %s303_s2, 16 }
 0x1c9   :  { %p230_p7 = scmp.ne.s32.totalorder %s303_s2, %s229_s9  ;;  %p233_p8 = scmp.lt.u32.totalorder %s229_s9, %s303_s2 }
 0x1cb   :  { %p235_p9 = pnand %p233_p8, %p230_p7 }
 0x1cd   :  { %238 = shalt.err (!%p235_p9)
}
 0x1ce   :  { %146 = dma.vmem_to_hbm [thread:$0]  %s144_s4, 16, %s303_s2, [#allocation4]  }
 0x1cf   :  { %243 = dma.done.wait [#allocation4], 16  }
 0x1d0   :  { %244 = vsyncadd [#allocation4], 4294967280 }
 0x1d1   :  { %150 = vsyncpa [#allocation3], 1 }
 0x1d2   :  { %151 = vsyncpa [#allocation6], 1 }
 0x1d3   :  { %152 = vsyncpa [#allocation4], 1 }

</bundles_post_ra>
